<compile_context>
chip_gen: v5e
topology: v5e:2x2
jax: 0.10.0
libtpu: 0.0.40
codegen_flags: <defaults>
</compile_context>

<pallas_src>
import jax
import jax.numpy as jnp
from jax.experimental import pallas as pl
from jax.experimental.pallas import tpu as pltpu


def _round_up(x, m):
    return (x + m - 1) // m * m


def dqn_kernel(x_ref, w1_ref, w2_ref, wh_ref, b1_ref, b2_ref, bh_ref, out_ref):
    # x_ref: (TB, Din_p) bf16; weights: bf16 (in, out); biases: f32 (1, out).
    x = x_ref[...]

    # Layer 1: ReLU(x @ W1 + b1), bf16 operands, f32 accumulation on the MXU.
    # Padded state columns are 0 and padded W1 rows are 0 -> exact.
    h = jnp.dot(x, w1_ref[...], preferred_element_type=jnp.float32)
    h = jnp.maximum(h + b1_ref[...], 0.0)

    # Layer 2: ReLU(h @ W2 + b2).  Padded lanes of h are 0 (zero W1 cols, zero
    # bias pad, ReLU(0)=0) and padded rows of W2 are 0 -> exact.
    h = jnp.dot(h.astype(jnp.bfloat16), w2_ref[...],
                preferred_element_type=jnp.float32)
    h = jnp.maximum(h + b2_ref[...], 0.0)

    # Fused output heads: [last1 | last2] concatenated along the lane axis.
    out = jnp.dot(h.astype(jnp.bfloat16), wh_ref[...],
                  preferred_element_type=jnp.float32) + bh_ref[...]
    out_ref[...] = out.astype(out_ref.dtype)


def pack_params(params):
    """Fuse the two heads and pad each layer to its own TPU-friendly shape.

    Weights are stored as (in, out) == torch_weight.T in bf16, rows padded to
    a multiple of 8 and cols to a multiple of 128 with zeros.  Biases stay f32.
    """
    w1, b1 = params["w1"], params["b1"]
    w2, b2 = params["w2"], params["b2"]
    w_head = jnp.concatenate([params["w3"], params["w4"]], axis=1)  # (hid2, 2A)
    b_head = jnp.concatenate([params["b3"], params["b4"]], axis=1)  # (1, 2A)

    input_dim, hid1 = w1.shape
    hid2 = w2.shape[1]
    n_actions = params["w3"].shape[1]

    din_p = _round_up(input_dim, 8)
    h1_p = _round_up(hid1, 128)
    h2_p = _round_up(hid2, 128)
    out_p = _round_up(2 * n_actions, 128)

    def pad_w(w, rows, cols):
        buf = jnp.zeros((rows, cols), jnp.bfloat16)
        return buf.at[: w.shape[0], : w.shape[1]].set(w.astype(jnp.bfloat16))

    def pad_b(b, cols):
        buf = jnp.zeros((1, cols), jnp.float32)
        return buf.at[:, : b.shape[1]].set(b.astype(jnp.float32))

    packed = dict(
        w1=pad_w(w1, din_p, h1_p),
        w2=pad_w(w2, h1_p, h2_p),
        wh=pad_w(w_head, h2_p, out_p),
        b1=pad_b(b1, h1_p),
        b2=pad_b(b2, h2_p),
        bh=pad_b(b_head, out_p),
    )
    dims = dict(input_dim=input_dim, hid1=hid1, hid2=hid2,
                n_actions=n_actions, din_p=din_p, out_p=out_p)
    return packed, dims


def dqn_forward(state, packed, dims):
    """state: (B, input_dim) f32.  Returns (out1, out2), each (B, n_actions) f32."""
    B, input_dim = state.shape
    A = dims["n_actions"]
    din_p = dims["din_p"]
    out_p = dims["out_p"]

    # Batch tile: multiple of 8 sublanes, capped at 512 rows per grid step to
    # amortize per-step pipeline overhead; additionally capped at ~B/2 so the
    # "parallel" axis has >= 2 grid steps (uses both TensorCores on v7x).
    TB = min(_round_up(B, 8), 512)
    if B > 8:
        TB = min(TB, max(8, _round_up((B + 1) // 2, 8)))
    B_pad = _round_up(B, TB)

    # Host-side prep: zero-pad batch rows / input columns, cast state to bf16
    # (halves the state DMA; the kernel accumulates in f32 on the MXU).
    x = state.astype(jnp.bfloat16)
    if B_pad != B or din_p != input_dim:
        x = jnp.pad(x, ((0, B_pad - B), (0, din_p - input_dim)))

    resident = lambda i: (0, 0)   # weights/biases: same block every grid step

    out = pl.pallas_call(
        dqn_kernel,
        out_shape=jax.ShapeDtypeStruct((B_pad, out_p), jnp.float32),
        grid=(B_pad // TB,),
        in_specs=[
            pl.BlockSpec((TB, din_p), lambda i: (i, 0)),   # state: batch-tiled
            pl.BlockSpec(packed["w1"].shape, resident),    # weights: resident
            pl.BlockSpec(packed["w2"].shape, resident),
            pl.BlockSpec(packed["wh"].shape, resident),
            pl.BlockSpec(packed["b1"].shape, resident),    # biases: resident
            pl.BlockSpec(packed["b2"].shape, resident),
            pl.BlockSpec(packed["bh"].shape, resident),
        ],
        out_specs=pl.BlockSpec((TB, out_p), lambda i: (i, 0)),
        compiler_params=pltpu.CompilerParams(
            dimension_semantics=("parallel",),             # megacore on v7x
        ),
    )(x, packed["w1"], packed["w2"], packed["wh"],
      packed["b1"], packed["b2"], packed["bh"])

    out = out[:B]
    return out[:, :A], out[:, A:2 * A]


def init_params(key, input_dim, hid1_dim, hid2_dim, n_actions):
    """Deterministic init mimicking nn.Linear's U(-1/sqrt(fan_in), 1/sqrt(fan_in)).

    Weights are stored as (in, out) == torch_weight.T; biases as (1, out).
    """
    keys = jax.random.split(key, 8)

    def linear(kw, kb, fan_in, fan_out):
        bound = 1.0 / jnp.sqrt(fan_in)
        w = jax.random.uniform(kw, (fan_in, fan_out), jnp.float32, -bound, bound)
        b = jax.random.uniform(kb, (1, fan_out), jnp.float32, -bound, bound)
        return w, b

    w1, b1 = linear(keys[0], keys[1], input_dim, hid1_dim)
    w2, b2 = linear(keys[2], keys[3], hid1_dim, hid2_dim)
    w3, b3 = linear(keys[4], keys[5], hid2_dim, n_actions)
    w4, b4 = linear(keys[6], keys[7], hid2_dim, n_actions)
    return dict(w1=w1, b1=b1, w2=w2, b2=b2, w3=w3, b3=b3, w4=w4, b4=b4)


def dqn_reference(state, p):
    """Pure-JAX f32 reference matching the PyTorch forward semantics."""
    h1 = jnp.maximum(state @ p["w1"] + p["b1"], 0.0)
    h2 = jnp.maximum(h1 @ p["w2"] + p["b2"], 0.0)
    return h2 @ p["w3"] + p["b3"], h2 @ p["w4"] + p["b4"]


def dqn_reference_bf16(state, p):
    """Reference mimicking the kernel numerics: bf16 operands, f32 accumulation."""
    bf = jnp.bfloat16
    x = state.astype(bf)
    h = jnp.dot(x, p["w1"].astype(bf), preferred_element_type=jnp.float32) + p["b1"]
    h = jnp.maximum(h, 0.0).astype(bf)
    h = jnp.dot(h, p["w2"].astype(bf), preferred_element_type=jnp.float32) + p["b2"]
    h = jnp.maximum(h, 0.0).astype(bf)
    o1 = jnp.dot(h, p["w3"].astype(bf), preferred_element_type=jnp.float32) + p["b3"]
    o2 = jnp.dot(h, p["w4"].astype(bf), preferred_element_type=jnp.float32) + p["b4"]
    return o1, o2


if __name__ == "__main__":
    # Small shapes consistent with the module's constructor.
    batch, input_dim, hid1_dim, hid2_dim, n_actions = 8, 16, 32, 32, 8

    key = jax.random.PRNGKey(0)
    k_params, k_state = jax.random.split(key)
    params = init_params(k_params, input_dim, hid1_dim, hid2_dim, n_actions)
    state = jax.random.normal(k_state, (batch, input_dim), dtype=jnp.float32)

    # Pack once on the host (would be cached / jitted in a real training loop).
    packed, dims = pack_params(params)

    out1, out2 = dqn_forward(state, packed, dims)
    jax.block_until_ready((out1, out2))

    assert out1.shape == (batch, n_actions) and out2.shape == (batch, n_actions)

    # Tight check against a reference with the same bf16/f32 numerics.
    r1, r2 = dqn_reference_bf16(state, params)
    assert jnp.allclose(out1, r1, atol=5e-3, rtol=5e-3)
    assert jnp.allclose(out2, r2, atol=5e-3, rtol=5e-3)

    # Looser sanity check against exact f32 PyTorch-equivalent semantics.
    f1, f2 = dqn_reference(state, params)
    assert jnp.allclose(out1, f1, atol=3e-2, rtol=3e-2)
    assert jnp.allclose(out2, f2, atol=3e-2, rtol=3e-2)

    print("KERNEL_OK")
</pallas_src>

<mosaic_0001>
module attributes {stable_mosaic.version = 11 : i64} {
  func.func @dqn_kernel(%arg0: i32, %arg1: memref<8x16xbf16, #tpu.memory_space<vmem>>, %arg2: memref<16x128xbf16, #tpu.memory_space<vmem>>, %arg3: memref<128x128xbf16, #tpu.memory_space<vmem>>, %arg4: memref<128x128xbf16, #tpu.memory_space<vmem>>, %arg5: memref<1x128xf32, #tpu.memory_space<vmem>>, %arg6: memref<1x128xf32, #tpu.memory_space<vmem>>, %arg7: memref<1x128xf32, #tpu.memory_space<vmem>>, %arg8: memref<8x128xf32, #tpu.memory_space<vmem>>) attributes {dimension_semantics = [#tpu.dimension_semantics<parallel>], iteration_bounds = array<i64: 1>, scalar_prefetch = 0 : i64, scratch_operands = 0 : i64, tpu.core_type = #tpu.core_type<tc>, window_params = [{transform_indices = @transform_0, window_bounds = array<i64: 8, 16>}, {pipeline_mode = #tpu.pipeline_mode<synchronous>, transform_indices = @transform_1, window_bounds = array<i64: 16, 128>}, {pipeline_mode = #tpu.pipeline_mode<synchronous>, transform_indices = @transform_2, window_bounds = array<i64: 128, 128>}, {pipeline_mode = #tpu.pipeline_mode<synchronous>, transform_indices = @transform_3, window_bounds = array<i64: 128, 128>}, {pipeline_mode = #tpu.pipeline_mode<synchronous>, transform_indices = @transform_4, window_bounds = array<i64: 1, 128>}, {pipeline_mode = #tpu.pipeline_mode<synchronous>, transform_indices = @transform_5, window_bounds = array<i64: 1, 128>}, {pipeline_mode = #tpu.pipeline_mode<synchronous>, transform_indices = @transform_6, window_bounds = array<i64: 1, 128>}, {transform_indices = @transform_7, window_bounds = array<i64: 8, 128>}]} {
    %c0 = arith.constant 0 : index
    %c0_0 = arith.constant 0 : index
    %0 = vector.load %arg1[%c0, %c0_0] : memref<8x16xbf16, #tpu.memory_space<vmem>>, vector<8x16xbf16>
    %c0_1 = arith.constant 0 : index
    %c0_2 = arith.constant 0 : index
    %1 = vector.load %arg2[%c0_1, %c0_2] : memref<16x128xbf16, #tpu.memory_space<vmem>>, vector<16x128xbf16>
    %cst = arith.constant dense<0.000000e+00> : vector<8x128xf32>
    %2 = tpu.matmul %0, %1, %cst {dimension_numbers = #tpu.dot_dimension_numbers<[1], [0], [0], [1], [0, 0, 1, 1], [], []>} : vector<8x16xbf16>, vector<16x128xbf16>, vector<8x128xf32> -> vector<8x128xf32>
    %c0_3 = arith.constant 0 : index
    %c0_4 = arith.constant 0 : index
    %3 = vector.load %arg5[%c0_3, %c0_4] : memref<1x128xf32, #tpu.memory_space<vmem>>, vector<1x128xf32>
    %4 = vector.broadcast %3 : vector<1x128xf32> to vector<8x128xf32>
    %5 = arith.addf %2, %4 : vector<8x128xf32>
    %cst_5 = arith.constant 0.000000e+00 : f32
    %6 = vector.broadcast %cst_5 : f32 to vector<8x128xf32>
    %7 = arith.maximumf %5, %6 : vector<8x128xf32>
    %8 = arith.truncf %7 : vector<8x128xf32> to vector<8x128xbf16>
    %c0_6 = arith.constant 0 : index
    %c0_7 = arith.constant 0 : index
    %9 = vector.load %arg3[%c0_6, %c0_7] : memref<128x128xbf16, #tpu.memory_space<vmem>>, vector<128x128xbf16>
    %cst_8 = arith.constant dense<0.000000e+00> : vector<8x128xf32>
    %10 = tpu.matmul %8, %9, %cst_8 {dimension_numbers = #tpu.dot_dimension_numbers<[1], [0], [0], [1], [0, 0, 1, 1], [], []>} : vector<8x128xbf16>, vector<128x128xbf16>, vector<8x128xf32> -> vector<8x128xf32>
    %c0_9 = arith.constant 0 : index
    %c0_10 = arith.constant 0 : index
    %11 = vector.load %arg6[%c0_9, %c0_10] : memref<1x128xf32, #tpu.memory_space<vmem>>, vector<1x128xf32>
    %12 = vector.broadcast %11 : vector<1x128xf32> to vector<8x128xf32>
    %13 = arith.addf %10, %12 : vector<8x128xf32>
    %cst_11 = arith.constant 0.000000e+00 : f32
    %14 = vector.broadcast %cst_11 : f32 to vector<8x128xf32>
    %15 = arith.maximumf %13, %14 : vector<8x128xf32>
    %16 = arith.truncf %15 : vector<8x128xf32> to vector<8x128xbf16>
    %c0_12 = arith.constant 0 : index
    %c0_13 = arith.constant 0 : index
    %17 = vector.load %arg4[%c0_12, %c0_13] : memref<128x128xbf16, #tpu.memory_space<vmem>>, vector<128x128xbf16>
    %cst_14 = arith.constant dense<0.000000e+00> : vector<8x128xf32>
    %18 = tpu.matmul %16, %17, %cst_14 {dimension_numbers = #tpu.dot_dimension_numbers<[1], [0], [0], [1], [0, 0, 1, 1], [], []>} : vector<8x128xbf16>, vector<128x128xbf16>, vector<8x128xf32> -> vector<8x128xf32>
    %c0_15 = arith.constant 0 : index
    %c0_16 = arith.constant 0 : index
    %19 = vector.load %arg7[%c0_15, %c0_16] : memref<1x128xf32, #tpu.memory_space<vmem>>, vector<1x128xf32>
    %20 = vector.broadcast %19 : vector<1x128xf32> to vector<8x128xf32>
    %21 = arith.addf %18, %20 : vector<8x128xf32>
    %c0_17 = arith.constant 0 : index
    %c0_18 = arith.constant 0 : index
    %22 = vector.load %arg8[%c0_17, %c0_18] : memref<8x128xf32, #tpu.memory_space<vmem>>, vector<8x128xf32>
    tpu.vector_store %arg8[%c0_17, %c0_18], %21 {strides = array<i32>} : memref<8x128xf32, #tpu.memory_space<vmem>>, vector<8x128xf32>,
    return
  }
  func.func @transform_0(%arg0: i32) -> (i32, i32) {
    %c0_i32 = arith.constant 0 : i32
    %c0_i32_0 = arith.constant 0 : i32
    return %arg0, %c0_i32 : i32, i32
  }
  func.func @transform_1(%arg0: i32) -> (i32, i32) {
    %c0_i32 = arith.constant 0 : i32
    %c0_i32_0 = arith.constant 0 : i32
    %c0_i32_1 = arith.constant 0 : i32
    return %c0_i32, %c0_i32_0 : i32, i32
  }
  func.func @transform_2(%arg0: i32) -> (i32, i32) {
    %c0_i32 = arith.constant 0 : i32
    %c0_i32_0 = arith.constant 0 : i32
    %c0_i32_1 = arith.constant 0 : i32
    return %c0_i32, %c0_i32_0 : i32, i32
  }
  func.func @transform_3(%arg0: i32) -> (i32, i32) {
    %c0_i32 = arith.constant 0 : i32
    %c0_i32_0 = arith.constant 0 : i32
    %c0_i32_1 = arith.constant 0 : i32
    return %c0_i32, %c0_i32_0 : i32, i32
  }
  func.func @transform_4(%arg0: i32) -> (i32, i32) {
    %c0_i32 = arith.constant 0 : i32
    %c0_i32_0 = arith.constant 0 : i32
    %c0_i32_1 = arith.constant 0 : i32
    return %c0_i32, %c0_i32_0 : i32, i32
  }
  func.func @transform_5(%arg0: i32) -> (i32, i32) {
    %c0_i32 = arith.constant 0 : i32
    %c0_i32_0 = arith.constant 0 : i32
    %c0_i32_1 = arith.constant 0 : i32
    return %c0_i32, %c0_i32_0 : i32, i32
  }
  func.func @transform_6(%arg0: i32) -> (i32, i32) {
    %c0_i32 = arith.constant 0 : i32
    %c0_i32_0 = arith.constant 0 : i32
    %c0_i32_1 = arith.constant 0 : i32
    return %c0_i32, %c0_i32_0 : i32, i32
  }
  func.func @transform_7(%arg0: i32) -> (i32, i32) {
    %c0_i32 = arith.constant 0 : i32
    %c0_i32_0 = arith.constant 0 : i32
    return %arg0, %c0_i32 : i32, i32
  }
}

</mosaic_0001>

<bundles_post_ra>
// kernel: tpu_custom_call.1
= control target key start
LH: loop header
LB: loop body
LE: loop exit
PB: predicated region body
PF: predicated region fallthrough
CT: control target
= control target key end

     0   :  { %12 = vsyncpa [#allocation3], 0  ;;  %s600_s0 = inlined_call_operand.hbm [shape: bf16[8,16], index: 0, kind: input, shape index: {}]   ;;  %s601_s1 = inlined_call_operand.hbm [shape: bf16[16,128], index: 1, kind: input, shape index: {}]   ;;  %s602_s2 = inlined_call_operand.hbm [shape: bf16[128,128], index: 2, kind: input, shape index: {}]   ;;  %s603_s3 = inlined_call_operand.hbm [shape: bf16[128,128], index: 3, kind: input, shape index: {}]   ;;  %s604_s4 = inlined_call_operand.vmem [shape: f32[1,128], index: 4, kind: input, shape index: {}]   ;;  %s605_s5 = inlined_call_operand.vmem [shape: f32[1,128], index: 5, kind: input, shape index: {}]   ;;  %s606_s6 = inlined_call_operand.vmem [shape: f32[1,128], index: 6, kind: input, shape index: {}]   ;;  %s607_s7 = inlined_call_operand.hbm [shape: f32[8,128], index: 7, kind: output, shape index: {}]  }
   0x1   :  { %13 = vsyncpa [#allocation6], 0 }
   0x2   :  { %14 = vsyncpa [#allocation9], 0  ;;  %s31_s26 = sshll.u32 %s601_s1, 4  ;;  %s32_s26 = int_to_ptr.hbm [resolvable:$true] %s31_s26 }
   0x3   :  { %15 = vsyncpa [#allocation4], 0  ;;  %s529_s27 = smov [#allocation5]   ;;  %s21_s8 = sshll.u32 %s600_s0, 4  ;;  %s22_s8 = int_to_ptr.hbm [resolvable:$true] %s21_s8 }
   0x4   :  { %s33_s28 = sshll.u32 %s529_s27, 4  ;;  %s530_s9 = smov 64   ;;  %s34_s28 = int_to_ptr.vmem [resolvable:$true] %s33_s28 }
   0x5   :  { %s531_s10 = smov 4   ;;  %s532_s11 = smov [#allocation2]  }
   0x6   :  { %39 = dma.hbm_to_vmem [thread:$0]  %s32_s26, 128, %s34_s28, [#allocation6], %s530_s9, %s530_s9, %s531_s10  }
   0x7   :  { %s23_s12 = sshll.u32 %s532_s11, 4  ;;  %s44_s15 = sshll.u32 %s602_s2, 4  ;;  %s24_s12 = int_to_ptr.vmem [resolvable:$true] %s23_s12  ;;  %s45_s15 = int_to_ptr.hbm [resolvable:$true] %s44_s15 }
   0x8   :  { %26 = dma.hbm_to_vmem [thread:$0]  %s22_s8, 64, %s24_s12, [#allocation3]  }
   0x9   :  { %s57_s17 = sshll.u32 %s603_s3, 4  ;;  %s533_s18 = smov [#allocation7]   ;;  %s58_s17 = int_to_ptr.hbm [resolvable:$true] %s57_s17 }
   0xa   :  { %s46_s19 = sshll.u32 %s533_s18, 4  ;;  %s534_s0 = smov [#allocation8]   ;;  %s47_s19 = int_to_ptr.vmem [resolvable:$true] %s46_s19 }
   0xb   :  { %52 = dma.hbm_to_vmem [thread:$0]  %s45_s15, 1024, %s47_s19, [#allocation6], %s530_s9, %s530_s9, %s531_s10  }
   0xc   :  { %s59_s20 = sshll.u32 %s534_s0, 4  ;;  %s60_s20 = int_to_ptr.vmem [resolvable:$true] %s59_s20 }
   0xd   :  { %65 = dma.hbm_to_vmem [thread:$0]  %s58_s17, 1024, %s60_s20, [#allocation9], %s530_s9, %s530_s9, %s531_s10  }
   0xe   :  { %521 = dma.done.wait [#allocation3], 64  }
   0xf   :  { %522 = vsyncadd [#allocation3], 4294967232 }
  0x10   :  { %523 = dma.done.wait [#allocation6], 1152  }
  0x11   :  { %524 = vsyncadd [#allocation6], 4294966144 }
  0x12   :  { %525 = dma.done.wait [#allocation9], 1024  }
  0x13   :  { %526 = vsyncadd [#allocation9], 4294966272  ;;  %v374_v0 = vld [vmem:[#allocation5] sm:$0xff]  ;;  %v89_v2 = vld [vmem:[#allocation2] sm:$0xf]  ;;  %vm102_vm0 = vcmask 130048  }
  0x14   :  { %v382_v1 = vld [vmem:[#allocation7 + $0x38] sm:$0xff]  ;;  %113 = vmatpush.bf16.msra.mxu0 %v374_v0  ;;  %v381_v3 = vld [vmem:[#allocation7 + $0x30] sm:$0xff]  ;;  %v380_v4 = vld [vmem:[#allocation7 + $0x28] sm:$0xff]  ;;  %s535_s24 = smov [#allocation10]   ;;  %s293_s28 = sshll.u32 %s607_s7, 4  ;;  %s294_s28 = int_to_ptr.hbm [resolvable:$true] %s293_s28 }
  0x15   :  { %189 = vmatpush.bf16.msra.mxu1 %v382_v1  ;;  %v379_v5 = vld [vmem:[#allocation7 + $0x20] sm:$0xff]  ;;  %v378_v6 = vld [vmem:[#allocation7 + $0x18] sm:$0xff]  ;;  %v377_v7 = vld [vmem:[#allocation7 + $0x10] sm:$0xff]  ;;  %s291_s25 = sshll.u32 %s535_s24, 4  ;;  %s292_s25 = int_to_ptr.vmem [resolvable:$true] %s291_s25 }
  0x16   :  { %v376_v8 = vld [vmem:[#allocation7 + $0x8] sm:$0xff]  ;;  %v375_v9 = vld [vmem:[#allocation7] sm:$0xff]  ;;  %v390_v10 = vld [vmem:[#allocation8 + $0x38] sm:$0xff] }
  0x17   :  { %309 = vmatmul.msk.bf16.vlgmr.msra.gmra.mxu0 %vm102_vm0, %v89_v2  ;;  %272 = vmatpush.bf16.msra.mxu2 %v390_v10  ;;  %v389_v11 = vld [vmem:[#allocation8 + $0x30] sm:$0xff]  ;;  %v388_v12 = vld [vmem:[#allocation8 + $0x28] sm:$0xff]  ;;  %v387_v13 = vld [vmem:[#allocation8 + $0x20] sm:$0xff] }
  0x18   :  { %v386_v14 = vld [vmem:[#allocation8 + $0x18] sm:$0xff]  ;;  %v385_v15 = vld [vmem:[#allocation8 + $0x10] sm:$0xff]  ;;  %v384_v22 = vld [vmem:[#allocation8 + $0x8] sm:$0xff] }
  0x19   :  { %190 = vmatpush.bf16.msra.mxu1 %v381_v3  ;;  %v398_v16 = vld [vmem:[%s604_s4] ss:$0 sm:$0xff]  ;;  %v383_v23 = vld [vmem:[#allocation8] sm:$0xff] }
  0x1a   :  { %v399_v24 = vld [vmem:[%s605_s5] ss:$0 sm:$0xff] }
  0x1b   :  { %273 = vmatpush.bf16.msra.mxu2 %v389_v11  ;;  %v400_v30 = vld [vmem:[%s606_s6] ss:$0 sm:$0xff] }
  0x1d   :  { %191 = vmatpush.bf16.msra.mxu1 %v380_v4 }
  0x1f   :  { %274 = vmatpush.bf16.msra.mxu2 %v388_v12 }
  0x21   :  { %192 = vmatpush.bf16.msra.mxu1 %v379_v5 }
  0x23   :  { %275 = vmatpush.bf16.msra.mxu2 %v387_v13 }
  0x25   :  { %193 = vmatpush.bf16.msra.mxu1 %v378_v6 }
  0x27   :  { %276 = vmatpush.bf16.msra.mxu2 %v386_v14 }
  0x29   :  { %194 = vmatpush.bf16.msra.mxu1 %v377_v7 }
  0x2b   :  { %277 = vmatpush.bf16.msra.mxu2 %v385_v15 }
  0x2d   :  { %195 = vmatpush.bf16.msra.mxu1 %v376_v8 }
  0x2f   :  { %278 = vmatpush.bf16.msra.mxu2 %v384_v22 }
  0x31   :  { %196 = vmatpush.bf16.msra.mxu1 %v375_v9 }
  0x33   :  { %279 = vmatpush.bf16.msra.mxu2 %v383_v23 }
  0x94   :  { %v115_v17 = vpop.f32.mrf.mxu0 }
  0x95   :  { %v116_v18 = vadd.f32 %v398_v16, %v115_v17 }
  0x97   :  { %v119_v19 = vmax.f32 %v116_v18, 0.0 }
  0x99   :  { %v120_v20 = vpack.c.bf16 %v119_v19, %v119_v19 }
  0x9b   :  { %197 = vmatmul.bf16.vlgmr.msra.gmra.mxu1 %v120_v20 }
  0x9c   :  { %v117_v21 = vpop.f32.mrf.mxu0 }
 0x118   :  { %v198_v25 = vpop.f32.mrf.mxu1 }
 0x119   :  { %v199_v26 = vadd.f32 %v399_v24, %v198_v25 }
 0x11b   :  { %v202_v27 = vmax.f32 %v199_v26, 0.0 }
 0x11d   :  { %v203_v28 = vpack.c.bf16 %v202_v27, %v202_v27 }
 0x11f   :  { %280 = vmatmul.bf16.vlgmr.msra.gmra.mxu2 %v203_v28 }
 0x120   :  { %v200_v29 = vpop.f32.mrf.mxu1 }
 0x1a2   :  { %v281_v31 = vpop.f32.mrf.mxu2 }
 0x1a3   :  { %v282_v32 = vadd.f32 %v400_v30, %v281_v31 }
 0x1a5   :  { %285 = vst [vmem:[#allocation10] sm:$0xff] %v282_v32 }
 0x1a6   :  { %296 = dma.vmem_to_hbm [thread:$0]  %s292_s25, 128, %s294_s28, [#allocation4]  }
 0x1aa   :  { %v283_v33 = vpop.f32.mrf.mxu2 }
 0x1ab   :  { %527 = dma.done.wait [#allocation4], 128  }
 0x1ac   :  { %528 = vsyncadd [#allocation4], 4294967168 }
 0x1ad   :  { %301 = vsyncpa [#allocation3], 1 }
 0x1ae   :  { %302 = vsyncpa [#allocation6], 1 }
 0x1af   :  { %303 = vsyncpa [#allocation9], 1 }
 0x1b0   :  { %304 = vsyncpa [#allocation4], 1 }

</bundles_post_ra>
